<compile_context>
chip_gen: v7x
topology: tpu7x:2x2x1
jax: 0.10.0
libtpu: 0.0.40
codegen_flags: <defaults>
</compile_context>

<pallas_src>
import functools

import jax
import jax.numpy as jnp
from jax.experimental import pallas as pl
from jax.experimental.pallas import tpu as pltpu


def _decoder_rnn_kernel(x_ref, h0_ref, wih_t_ref, whh_blk_ref, b_ref,
                        wfc_t_ref, bfc_ref, out_ref,
                        *, num_layers, seq_len, batch, hidden):
    f32 = jnp.float32
    bf16 = jnp.bfloat16
    L, B, H = num_layers, batch, hidden

    # Grid-invariant loads (tiny at these sizes; stays well inside the vreg
    # budget -- see TODO above for the large-H regime).
    wih_t_rest = [wih_t_ref[l] for l in range(1, L)]   # bf16 (H, H), layers 1..L-1
    whh_blk = whh_blk_ref[...]                         # bf16 (L*H, L*H) block-diagonal
    bias = [b_ref[l] for l in range(L)]                # f32 (1, H), b_ih + b_hh pre-summed

    # Layer-0 input projection for ALL timesteps in one batched matmul, kept as
    # a register value (never round-trips through VMEM).
    xproj = (jnp.dot(x_ref[...], wih_t_ref[0], preferred_element_type=f32)
             + bias[0])                                # f32 (S*B, H)

    # Recurrence: the L per-layer hidden states are fused into a single
    # (B, L*H) register-resident state; both h @ W_hh^T terms are computed with
    # ONE block-diagonal matmul per step.
    h = jnp.concatenate([h0_ref[l].astype(f32) for l in range(L)], axis=-1)

    tops = []
    for t in range(seq_len):                 # static, fully unrolled
        hh = jnp.dot(h.astype(bf16), whh_blk, preferred_element_type=f32)
        # Layer 0: input projection (incl. bias) already hoisted above.
        inp = jnp.tanh(xproj[t * B:(t + 1) * B, :] + hh[:, 0:H])
        new_h = [inp]
        # Layers 1..L-1 (eval mode: no inter-layer dropout).
        for l in range(1, L):
            pre = (jnp.dot(inp.astype(bf16), wih_t_rest[l - 1],
                           preferred_element_type=f32)
                   + hh[:, l * H:(l + 1) * H] + bias[l])
            inp = jnp.tanh(pre)
            new_h.append(inp)
        tops.append(inp)
        h = jnp.concatenate(new_h, axis=-1)

    # Deferred fc: one (S*B, H) @ (H, O_pad) matmul + one lane-dense store.
    htop = jnp.concatenate(tops, axis=0).astype(bf16)          # (S*B, H)
    out = jnp.dot(htop, wfc_t_ref[...], preferred_element_type=f32)
    out_ref[...] = (out + bfc_ref[...]).astype(out_ref.dtype)


def decoder_rnn_forward(x, h0, w_ih, w_hh, b_ih, b_hh, w_fc, b_fc):
    """x: (S, B, H); h0: (L, B, H); returns (S, B, O)."""
    S, B, H = x.shape
    L = h0.shape[0]
    O = w_fc.shape[0]
    O_pad = ((O + 127) // 128) * 128          # lane-dense output (unmasked stores)
    bf16 = jnp.bfloat16

    # Grid-invariant prep done once in the wrapper (not inside the kernel):
    wih_t = jnp.transpose(w_ih, (0, 2, 1)).astype(bf16)        # (L, H, H)
    # Block-diagonal recurrent weight: blockdiag(W_hh0^T, ..., W_hh{L-1}^T).
    whh_blk = jnp.zeros((L * H, L * H), jnp.float32)
    for l in range(L):
        whh_blk = whh_blk.at[l * H:(l + 1) * H, l * H:(l + 1) * H].set(w_hh[l].T)
    whh_blk = whh_blk.astype(bf16)
    b_sum = (b_ih + b_hh).reshape(L, 1, H).astype(jnp.float32)  # pre-summed biases
    wfc_t = jnp.zeros((H, O_pad), jnp.float32).at[:, :O].set(w_fc.T).astype(bf16)
    bfc_p = jnp.zeros((1, O_pad), jnp.float32).at[:, :O].set(b_fc.reshape(1, O))

    x2 = x.reshape(S * B, H).astype(bf16)                       # row t*B + b

    kernel = functools.partial(_decoder_rnn_kernel, num_layers=L, seq_len=S,
                               batch=B, hidden=H)

    out2 = pl.pallas_call(
        kernel,
        out_shape=jax.ShapeDtypeStruct((S * B, O_pad), jnp.float32),
        grid_spec=pl.GridSpec(
            grid=(1,),
            in_specs=[
                pl.BlockSpec((S * B, H), lambda i: (0, 0)),        # x (flattened, bf16)
                pl.BlockSpec((L, B, H), lambda i: (0, 0, 0)),      # h0 (f32)
                pl.BlockSpec((L, H, H), lambda i: (0, 0, 0)),      # W_ih^T stacked (bf16)
                pl.BlockSpec((L * H, L * H), lambda i: (0, 0)),    # blockdiag W_hh^T (bf16)
                pl.BlockSpec((L, 1, H), lambda i: (0, 0, 0)),      # b_ih + b_hh (f32)
                pl.BlockSpec((H, O_pad), lambda i: (0, 0)),        # W_fc^T padded (bf16)
                pl.BlockSpec((1, O_pad), lambda i: (0, 0)),        # b_fc padded (f32)
            ],
            out_specs=pl.BlockSpec((S * B, O_pad), lambda i: (0, 0)),
        ),
        compiler_params=pltpu.CompilerParams(
            dimension_semantics=("arbitrary",),
        ),
    )(x2, h0, wih_t, whh_blk, b_sum, wfc_t, bfc_p)

    return out2[:, :O].reshape(S, B, O)


def reference_forward(x, h0, w_ih, w_hh, b_ih, b_hh, w_fc, b_fc):
    """Pure-JAX f32 reference of eval-mode nn.RNN + nn.Linear."""
    S, B, H = x.shape
    L = h0.shape[0]
    h = [h0[l] for l in range(L)]
    outs = []
    for t in range(S):
        inp = x[t]
        for l in range(L):
            pre = inp @ w_ih[l].T + b_ih[l] + h[l] @ w_hh[l].T + b_hh[l]
            h[l] = jnp.tanh(pre)
            inp = h[l]
        outs.append(inp @ w_fc.T + b_fc)
    return jnp.stack(outs, axis=0)


if __name__ == "__main__":
    # Module hyperparameters (small, consistent with the forward semantics).
    hidden_size = 32
    output_size = 16
    num_layers = 2
    seq_len = 8
    batch = 2

    key = jax.random.PRNGKey(0)
    keys = jax.random.split(key, 10)
    bound = 1.0 / jnp.sqrt(hidden_size)

    # Deterministic synthetic parameters (shapes from nn.RNN / nn.Linear).
    w_ih = jax.random.uniform(keys[0], (num_layers, hidden_size, hidden_size),
                              jnp.float32, -bound, bound)
    w_hh = jax.random.uniform(keys[1], (num_layers, hidden_size, hidden_size),
                              jnp.float32, -bound, bound)
    b_ih = jax.random.uniform(keys[2], (num_layers, hidden_size),
                              jnp.float32, -bound, bound)
    b_hh = jax.random.uniform(keys[3], (num_layers, hidden_size),
                              jnp.float32, -bound, bound)
    w_fc = jax.random.uniform(keys[4], (output_size, hidden_size),
                              jnp.float32, -bound, bound)
    b_fc = jax.random.uniform(keys[5], (output_size,),
                              jnp.float32, -bound, bound)

    # Inputs.
    x = jax.random.normal(keys[6], (seq_len, batch, hidden_size), jnp.float32)
    h0 = jax.random.normal(keys[7], (num_layers, batch, hidden_size), jnp.float32)

    out = decoder_rnn_forward(x, h0, w_ih, w_hh, b_ih, b_hh, w_fc, b_fc)
    out = jax.block_until_ready(out)

    ref = reference_forward(x, h0, w_ih, w_hh, b_ih, b_hh, w_fc, b_fc)
    assert out.shape == (seq_len, batch, output_size)
    # bf16 weights/inputs on the MXU -> relaxed tolerance vs. the f32 reference.
    assert jnp.allclose(out, ref, atol=5e-2, rtol=5e-2)

    print("KERNEL_OK")
</pallas_src>

<mosaic_0001>
module attributes {stable_mosaic.version = 11 : i64} {
  func.func @_decoder_rnn_kernel(%arg0: i32, %arg1: memref<16x32xbf16, #tpu.memory_space<vmem>>, %arg2: memref<2x2x32xf32, #tpu.memory_space<vmem>>, %arg3: memref<2x32x32xbf16, #tpu.memory_space<vmem>>, %arg4: memref<64x64xbf16, #tpu.memory_space<vmem>>, %arg5: memref<2x1x32xf32, #tpu.memory_space<vmem>>, %arg6: memref<32x128xbf16, #tpu.memory_space<vmem>>, %arg7: memref<1x128xf32, #tpu.memory_space<vmem>>, %arg8: memref<16x128xf32, #tpu.memory_space<vmem>>) attributes {dimension_semantics = [#tpu.dimension_semantics<arbitrary>], iteration_bounds = array<i64: 1>, scalar_prefetch = 0 : i64, scratch_operands = 0 : i64, tpu.core_type = #tpu.core_type<tc>, window_params = [{pipeline_mode = #tpu.pipeline_mode<synchronous>, transform_indices = @transform_0, window_bounds = array<i64: 16, 32>}, {pipeline_mode = #tpu.pipeline_mode<synchronous>, transform_indices = @transform_1, window_bounds = array<i64: 2, 2, 32>}, {pipeline_mode = #tpu.pipeline_mode<synchronous>, transform_indices = @transform_2, window_bounds = array<i64: 2, 32, 32>}, {pipeline_mode = #tpu.pipeline_mode<synchronous>, transform_indices = @transform_3, window_bounds = array<i64: 64, 64>}, {pipeline_mode = #tpu.pipeline_mode<synchronous>, transform_indices = @transform_4, window_bounds = array<i64: 2, 1, 32>}, {pipeline_mode = #tpu.pipeline_mode<synchronous>, transform_indices = @transform_5, window_bounds = array<i64: 32, 128>}, {pipeline_mode = #tpu.pipeline_mode<synchronous>, transform_indices = @transform_6, window_bounds = array<i64: 1, 128>}, {pipeline_mode = #tpu.pipeline_mode<synchronous>, transform_indices = @transform_7, window_bounds = array<i64: 16, 128>}]} {
    %c1 = arith.constant 1 : index
    %c0 = arith.constant 0 : index
    %c0_0 = arith.constant 0 : index
    %0 = vector.load %arg3[%c1, %c0, %c0_0] : memref<2x32x32xbf16, #tpu.memory_space<vmem>>, vector<1x32x32xbf16>
    %1 = vector.shape_cast %0 : vector<1x32x32xbf16> to vector<32x32xbf16>
    %c0_1 = arith.constant 0 : index
    %c0_2 = arith.constant 0 : index
    %2 = vector.load %arg4[%c0_1, %c0_2] : memref<64x64xbf16, #tpu.memory_space<vmem>>, vector<64x64xbf16>
    %c0_3 = arith.constant 0 : index
    %c0_4 = arith.constant 0 : index
    %c0_5 = arith.constant 0 : index
    %3 = vector.load %arg5[%c0_3, %c0_4, %c0_5] : memref<2x1x32xf32, #tpu.memory_space<vmem>>, vector<1x1x32xf32>
    %4 = vector.shape_cast %3 : vector<1x1x32xf32> to vector<1x32xf32>
    %c1_6 = arith.constant 1 : index
    %c0_7 = arith.constant 0 : index
    %c0_8 = arith.constant 0 : index
    %5 = vector.load %arg5[%c1_6, %c0_7, %c0_8] : memref<2x1x32xf32, #tpu.memory_space<vmem>>, vector<1x1x32xf32>
    %6 = vector.shape_cast %5 : vector<1x1x32xf32> to vector<1x32xf32>
    %c0_9 = arith.constant 0 : index
    %c0_10 = arith.constant 0 : index
    %7 = vector.load %arg1[%c0_9, %c0_10] : memref<16x32xbf16, #tpu.memory_space<vmem>>, vector<16x32xbf16>
    %c0_11 = arith.constant 0 : index
    %c0_12 = arith.constant 0 : index
    %c0_13 = arith.constant 0 : index
    %8 = vector.load %arg3[%c0_11, %c0_12, %c0_13] : memref<2x32x32xbf16, #tpu.memory_space<vmem>>, vector<1x32x32xbf16>
    %9 = vector.shape_cast %8 : vector<1x32x32xbf16> to vector<32x32xbf16>
    %cst = arith.constant dense<0.000000e+00> : vector<16x32xf32>
    %10 = tpu.matmul %7, %9, %cst {dimension_numbers = #tpu.dot_dimension_numbers<[1], [0], [0], [1], [0, 0, 1, 1], [], []>} : vector<16x32xbf16>, vector<32x32xbf16>, vector<16x32xf32> -> vector<16x32xf32>
    %11 = vector.broadcast %4 : vector<1x32xf32> to vector<16x32xf32>
    %12 = arith.addf %10, %11 : vector<16x32xf32>
    %c0_14 = arith.constant 0 : index
    %c0_15 = arith.constant 0 : index
    %c0_16 = arith.constant 0 : index
    %13 = vector.load %arg2[%c0_14, %c0_15, %c0_16] : memref<2x2x32xf32, #tpu.memory_space<vmem>>, vector<1x2x32xf32>
    %14 = vector.shape_cast %13 : vector<1x2x32xf32> to vector<2x32xf32>
    %c1_17 = arith.constant 1 : index
    %c0_18 = arith.constant 0 : index
    %c0_19 = arith.constant 0 : index
    %15 = vector.load %arg2[%c1_17, %c0_18, %c0_19] : memref<2x2x32xf32, #tpu.memory_space<vmem>>, vector<1x2x32xf32>
    %16 = vector.shape_cast %15 : vector<1x2x32xf32> to vector<2x32xf32>
    %17 = tpu.concatenate %14, %16 in 1 : vector<2x32xf32>, vector<2x32xf32> -> vector<2x64xf32>
    %18 = arith.truncf %17 : vector<2x64xf32> to vector<2x64xbf16>
    %cst_20 = arith.constant dense<0.000000e+00> : vector<2x64xf32>
    %19 = tpu.matmul %18, %2, %cst_20 {dimension_numbers = #tpu.dot_dimension_numbers<[1], [0], [0], [1], [0, 0, 1, 1], [], []>} : vector<2x64xbf16>, vector<64x64xbf16>, vector<2x64xf32> -> vector<2x64xf32>
    %20 = vector.extract_strided_slice %12 {offsets = [0, 0], sizes = [2, 32], strides = [1, 1]} : vector<16x32xf32> to vector<2x32xf32>
    %21 = vector.extract_strided_slice %19 {offsets = [0, 0], sizes = [2, 32], strides = [1, 1]} : vector<2x64xf32> to vector<2x32xf32>
    %22 = arith.addf %20, %21 : vector<2x32xf32>
    %23 = math.tanh %22 : vector<2x32xf32>
    %24 = arith.truncf %23 : vector<2x32xf32> to vector<2x32xbf16>
    %cst_21 = arith.constant dense<0.000000e+00> : vector<2x32xf32>
    %25 = tpu.matmul %24, %1, %cst_21 {dimension_numbers = #tpu.dot_dimension_numbers<[1], [0], [0], [1], [0, 0, 1, 1], [], []>} : vector<2x32xbf16>, vector<32x32xbf16>, vector<2x32xf32> -> vector<2x32xf32>
    %26 = vector.extract_strided_slice %19 {offsets = [0, 32], sizes = [2, 32], strides = [1, 1]} : vector<2x64xf32> to vector<2x32xf32>
    %27 = arith.addf %25, %26 : vector<2x32xf32>
    %28 = vector.broadcast %6 : vector<1x32xf32> to vector<2x32xf32>
    %29 = arith.addf %27, %28 : vector<2x32xf32>
    %30 = math.tanh %29 : vector<2x32xf32>
    %31 = tpu.concatenate %23, %30 in 1 : vector<2x32xf32>, vector<2x32xf32> -> vector<2x64xf32>
    %32 = arith.truncf %31 : vector<2x64xf32> to vector<2x64xbf16>
    %cst_22 = arith.constant dense<0.000000e+00> : vector<2x64xf32>
    %33 = tpu.matmul %32, %2, %cst_22 {dimension_numbers = #tpu.dot_dimension_numbers<[1], [0], [0], [1], [0, 0, 1, 1], [], []>} : vector<2x64xbf16>, vector<64x64xbf16>, vector<2x64xf32> -> vector<2x64xf32>
    %34 = vector.extract_strided_slice %12 {offsets = [2, 0], sizes = [2, 32], strides = [1, 1]} : vector<16x32xf32> to vector<2x32xf32>
    %35 = vector.extract_strided_slice %33 {offsets = [0, 0], sizes = [2, 32], strides = [1, 1]} : vector<2x64xf32> to vector<2x32xf32>
    %36 = arith.addf %34, %35 : vector<2x32xf32>
    %37 = math.tanh %36 : vector<2x32xf32>
    %38 = arith.truncf %37 : vector<2x32xf32> to vector<2x32xbf16>
    %cst_23 = arith.constant dense<0.000000e+00> : vector<2x32xf32>
    %39 = tpu.matmul %38, %1, %cst_23 {dimension_numbers = #tpu.dot_dimension_numbers<[1], [0], [0], [1], [0, 0, 1, 1], [], []>} : vector<2x32xbf16>, vector<32x32xbf16>, vector<2x32xf32> -> vector<2x32xf32>
    %40 = vector.extract_strided_slice %33 {offsets = [0, 32], sizes = [2, 32], strides = [1, 1]} : vector<2x64xf32> to vector<2x32xf32>
    %41 = arith.addf %39, %40 : vector<2x32xf32>
    %42 = vector.broadcast %6 : vector<1x32xf32> to vector<2x32xf32>
    %43 = arith.addf %41, %42 : vector<2x32xf32>
    %44 = math.tanh %43 : vector<2x32xf32>
    %45 = tpu.concatenate %37, %44 in 1 : vector<2x32xf32>, vector<2x32xf32> -> vector<2x64xf32>
    %46 = arith.truncf %45 : vector<2x64xf32> to vector<2x64xbf16>
    %cst_24 = arith.constant dense<0.000000e+00> : vector<2x64xf32>
    %47 = tpu.matmul %46, %2, %cst_24 {dimension_numbers = #tpu.dot_dimension_numbers<[1], [0], [0], [1], [0, 0, 1, 1], [], []>} : vector<2x64xbf16>, vector<64x64xbf16>, vector<2x64xf32> -> vector<2x64xf32>
    %48 = vector.extract_strided_slice %12 {offsets = [4, 0], sizes = [2, 32], strides = [1, 1]} : vector<16x32xf32> to vector<2x32xf32>
    %49 = vector.extract_strided_slice %47 {offsets = [0, 0], sizes = [2, 32], strides = [1, 1]} : vector<2x64xf32> to vector<2x32xf32>
    %50 = arith.addf %48, %49 : vector<2x32xf32>
    %51 = math.tanh %50 : vector<2x32xf32>
    %52 = arith.truncf %51 : vector<2x32xf32> to vector<2x32xbf16>
    %cst_25 = arith.constant dense<0.000000e+00> : vector<2x32xf32>
    %53 = tpu.matmul %52, %1, %cst_25 {dimension_numbers = #tpu.dot_dimension_numbers<[1], [0], [0], [1], [0, 0, 1, 1], [], []>} : vector<2x32xbf16>, vector<32x32xbf16>, vector<2x32xf32> -> vector<2x32xf32>
    %54 = vector.extract_strided_slice %47 {offsets = [0, 32], sizes = [2, 32], strides = [1, 1]} : vector<2x64xf32> to vector<2x32xf32>
    %55 = arith.addf %53, %54 : vector<2x32xf32>
    %56 = vector.broadcast %6 : vector<1x32xf32> to vector<2x32xf32>
    %57 = arith.addf %55, %56 : vector<2x32xf32>
    %58 = math.tanh %57 : vector<2x32xf32>
    %59 = tpu.concatenate %51, %58 in 1 : vector<2x32xf32>, vector<2x32xf32> -> vector<2x64xf32>
    %60 = arith.truncf %59 : vector<2x64xf32> to vector<2x64xbf16>
    %cst_26 = arith.constant dense<0.000000e+00> : vector<2x64xf32>
    %61 = tpu.matmul %60, %2, %cst_26 {dimension_numbers = #tpu.dot_dimension_numbers<[1], [0], [0], [1], [0, 0, 1, 1], [], []>} : vector<2x64xbf16>, vector<64x64xbf16>, vector<2x64xf32> -> vector<2x64xf32>
    %62 = vector.extract_strided_slice %12 {offsets = [6, 0], sizes = [2, 32], strides = [1, 1]} : vector<16x32xf32> to vector<2x32xf32>
    %63 = vector.extract_strided_slice %61 {offsets = [0, 0], sizes = [2, 32], strides = [1, 1]} : vector<2x64xf32> to vector<2x32xf32>
    %64 = arith.addf %62, %63 : vector<2x32xf32>
    %65 = math.tanh %64 : vector<2x32xf32>
    %66 = arith.truncf %65 : vector<2x32xf32> to vector<2x32xbf16>
    %cst_27 = arith.constant dense<0.000000e+00> : vector<2x32xf32>
    %67 = tpu.matmul %66, %1, %cst_27 {dimension_numbers = #tpu.dot_dimension_numbers<[1], [0], [0], [1], [0, 0, 1, 1], [], []>} : vector<2x32xbf16>, vector<32x32xbf16>, vector<2x32xf32> -> vector<2x32xf32>
    %68 = vector.extract_strided_slice %61 {offsets = [0, 32], sizes = [2, 32], strides = [1, 1]} : vector<2x64xf32> to vector<2x32xf32>
    %69 = arith.addf %67, %68 : vector<2x32xf32>
    %70 = vector.broadcast %6 : vector<1x32xf32> to vector<2x32xf32>
    %71 = arith.addf %69, %70 : vector<2x32xf32>
    %72 = math.tanh %71 : vector<2x32xf32>
    %73 = tpu.concatenate %65, %72 in 1 : vector<2x32xf32>, vector<2x32xf32> -> vector<2x64xf32>
    %74 = arith.truncf %73 : vector<2x64xf32> to vector<2x64xbf16>
    %cst_28 = arith.constant dense<0.000000e+00> : vector<2x64xf32>
    %75 = tpu.matmul %74, %2, %cst_28 {dimension_numbers = #tpu.dot_dimension_numbers<[1], [0], [0], [1], [0, 0, 1, 1], [], []>} : vector<2x64xbf16>, vector<64x64xbf16>, vector<2x64xf32> -> vector<2x64xf32>
    %76 = vector.extract_strided_slice %12 {offsets = [8, 0], sizes = [2, 32], strides = [1, 1]} : vector<16x32xf32> to vector<2x32xf32>
    %77 = vector.extract_strided_slice %75 {offsets = [0, 0], sizes = [2, 32], strides = [1, 1]} : vector<2x64xf32> to vector<2x32xf32>
    %78 = arith.addf %76, %77 : vector<2x32xf32>
    %79 = math.tanh %78 : vector<2x32xf32>
    %80 = arith.truncf %79 : vector<2x32xf32> to vector<2x32xbf16>
    %cst_29 = arith.constant dense<0.000000e+00> : vector<2x32xf32>
    %81 = tpu.matmul %80, %1, %cst_29 {dimension_numbers = #tpu.dot_dimension_numbers<[1], [0], [0], [1], [0, 0, 1, 1], [], []>} : vector<2x32xbf16>, vector<32x32xbf16>, vector<2x32xf32> -> vector<2x32xf32>
    %82 = vector.extract_strided_slice %75 {offsets = [0, 32], sizes = [2, 32], strides = [1, 1]} : vector<2x64xf32> to vector<2x32xf32>
    %83 = arith.addf %81, %82 : vector<2x32xf32>
    %84 = vector.broadcast %6 : vector<1x32xf32> to vector<2x32xf32>
    %85 = arith.addf %83, %84 : vector<2x32xf32>
    %86 = math.tanh %85 : vector<2x32xf32>
    %87 = tpu.concatenate %79, %86 in 1 : vector<2x32xf32>, vector<2x32xf32> -> vector<2x64xf32>
    %88 = arith.truncf %87 : vector<2x64xf32> to vector<2x64xbf16>
    %cst_30 = arith.constant dense<0.000000e+00> : vector<2x64xf32>
    %89 = tpu.matmul %88, %2, %cst_30 {dimension_numbers = #tpu.dot_dimension_numbers<[1], [0], [0], [1], [0, 0, 1, 1], [], []>} : vector<2x64xbf16>, vector<64x64xbf16>, vector<2x64xf32> -> vector<2x64xf32>
    %90 = vector.extract_strided_slice %12 {offsets = [10, 0], sizes = [2, 32], strides = [1, 1]} : vector<16x32xf32> to vector<2x32xf32>
    %91 = vector.extract_strided_slice %89 {offsets = [0, 0], sizes = [2, 32], strides = [1, 1]} : vector<2x64xf32> to vector<2x32xf32>
    %92 = arith.addf %90, %91 : vector<2x32xf32>
    %93 = math.tanh %92 : vector<2x32xf32>
    %94 = arith.truncf %93 : vector<2x32xf32> to vector<2x32xbf16>
    %cst_31 = arith.constant dense<0.000000e+00> : vector<2x32xf32>
    %95 = tpu.matmul %94, %1, %cst_31 {dimension_numbers = #tpu.dot_dimension_numbers<[1], [0], [0], [1], [0, 0, 1, 1], [], []>} : vector<2x32xbf16>, vector<32x32xbf16>, vector<2x32xf32> -> vector<2x32xf32>
    %96 = vector.extract_strided_slice %89 {offsets = [0, 32], sizes = [2, 32], strides = [1, 1]} : vector<2x64xf32> to vector<2x32xf32>
    %97 = arith.addf %95, %96 : vector<2x32xf32>
    %98 = vector.broadcast %6 : vector<1x32xf32> to vector<2x32xf32>
    %99 = arith.addf %97, %98 : vector<2x32xf32>
    %100 = math.tanh %99 : vector<2x32xf32>
    %101 = tpu.concatenate %93, %100 in 1 : vector<2x32xf32>, vector<2x32xf32> -> vector<2x64xf32>
    %102 = arith.truncf %101 : vector<2x64xf32> to vector<2x64xbf16>
    %cst_32 = arith.constant dense<0.000000e+00> : vector<2x64xf32>
    %103 = tpu.matmul %102, %2, %cst_32 {dimension_numbers = #tpu.dot_dimension_numbers<[1], [0], [0], [1], [0, 0, 1, 1], [], []>} : vector<2x64xbf16>, vector<64x64xbf16>, vector<2x64xf32> -> vector<2x64xf32>
    %104 = vector.extract_strided_slice %12 {offsets = [12, 0], sizes = [2, 32], strides = [1, 1]} : vector<16x32xf32> to vector<2x32xf32>
    %105 = vector.extract_strided_slice %103 {offsets = [0, 0], sizes = [2, 32], strides = [1, 1]} : vector<2x64xf32> to vector<2x32xf32>
    %106 = arith.addf %104, %105 : vector<2x32xf32>
    %107 = math.tanh %106 : vector<2x32xf32>
    %108 = arith.truncf %107 : vector<2x32xf32> to vector<2x32xbf16>
    %cst_33 = arith.constant dense<0.000000e+00> : vector<2x32xf32>
    %109 = tpu.matmul %108, %1, %cst_33 {dimension_numbers = #tpu.dot_dimension_numbers<[1], [0], [0], [1], [0, 0, 1, 1], [], []>} : vector<2x32xbf16>, vector<32x32xbf16>, vector<2x32xf32> -> vector<2x32xf32>
    %110 = vector.extract_strided_slice %103 {offsets = [0, 32], sizes = [2, 32], strides = [1, 1]} : vector<2x64xf32> to vector<2x32xf32>
    %111 = arith.addf %109, %110 : vector<2x32xf32>
    %112 = vector.broadcast %6 : vector<1x32xf32> to vector<2x32xf32>
    %113 = arith.addf %111, %112 : vector<2x32xf32>
    %114 = math.tanh %113 : vector<2x32xf32>
    %115 = tpu.concatenate %107, %114 in 1 : vector<2x32xf32>, vector<2x32xf32> -> vector<2x64xf32>
    %116 = arith.truncf %115 : vector<2x64xf32> to vector<2x64xbf16>
    %cst_34 = arith.constant dense<0.000000e+00> : vector<2x64xf32>
    %117 = tpu.matmul %116, %2, %cst_34 {dimension_numbers = #tpu.dot_dimension_numbers<[1], [0], [0], [1], [0, 0, 1, 1], [], []>} : vector<2x64xbf16>, vector<64x64xbf16>, vector<2x64xf32> -> vector<2x64xf32>
    %118 = vector.extract_strided_slice %12 {offsets = [14, 0], sizes = [2, 32], strides = [1, 1]} : vector<16x32xf32> to vector<2x32xf32>
    %119 = vector.extract_strided_slice %117 {offsets = [0, 0], sizes = [2, 32], strides = [1, 1]} : vector<2x64xf32> to vector<2x32xf32>
    %120 = arith.addf %118, %119 : vector<2x32xf32>
    %121 = math.tanh %120 : vector<2x32xf32>
    %122 = arith.truncf %121 : vector<2x32xf32> to vector<2x32xbf16>
    %cst_35 = arith.constant dense<0.000000e+00> : vector<2x32xf32>
    %123 = tpu.matmul %122, %1, %cst_35 {dimension_numbers = #tpu.dot_dimension_numbers<[1], [0], [0], [1], [0, 0, 1, 1], [], []>} : vector<2x32xbf16>, vector<32x32xbf16>, vector<2x32xf32> -> vector<2x32xf32>
    %124 = vector.extract_strided_slice %117 {offsets = [0, 32], sizes = [2, 32], strides = [1, 1]} : vector<2x64xf32> to vector<2x32xf32>
    %125 = arith.addf %123, %124 : vector<2x32xf32>
    %126 = vector.broadcast %6 : vector<1x32xf32> to vector<2x32xf32>
    %127 = arith.addf %125, %126 : vector<2x32xf32>
    %128 = math.tanh %127 : vector<2x32xf32>
    %129 = tpu.concatenate %30, %44, %58, %72, %86, %100, %114, %128 in 0 : vector<2x32xf32>, vector<2x32xf32>, vector<2x32xf32>, vector<2x32xf32>, vector<2x32xf32>, vector<2x32xf32>, vector<2x32xf32>, vector<2x32xf32> -> vector<16x32xf32>
    %130 = arith.truncf %129 : vector<16x32xf32> to vector<16x32xbf16>
    %c0_36 = arith.constant 0 : index
    %c0_37 = arith.constant 0 : index
    %131 = vector.load %arg6[%c0_36, %c0_37] : memref<32x128xbf16, #tpu.memory_space<vmem>>, vector<32x128xbf16>
    %cst_38 = arith.constant dense<0.000000e+00> : vector<16x128xf32>
    %132 = tpu.matmul %130, %131, %cst_38 {dimension_numbers = #tpu.dot_dimension_numbers<[1], [0], [0], [1], [0, 0, 1, 1], [], []>} : vector<16x32xbf16>, vector<32x128xbf16>, vector<16x128xf32> -> vector<16x128xf32>
    %c0_39 = arith.constant 0 : index
    %c0_40 = arith.constant 0 : index
    %133 = vector.load %arg7[%c0_39, %c0_40] : memref<1x128xf32, #tpu.memory_space<vmem>>, vector<1x128xf32>
    %134 = vector.broadcast %133 : vector<1x128xf32> to vector<16x128xf32>
    %135 = arith.addf %132, %134 : vector<16x128xf32>
    %c0_41 = arith.constant 0 : index
    %c0_42 = arith.constant 0 : index
    %136 = vector.load %arg8[%c0_41, %c0_42] : memref<16x128xf32, #tpu.memory_space<vmem>>, vector<16x128xf32>
    tpu.vector_store %arg8[%c0_41, %c0_42], %135 {strides = array<i32>} : memref<16x128xf32, #tpu.memory_space<vmem>>, vector<16x128xf32>,
    return
  }
  func.func @transform_0(%arg0: i32) -> (i32, i32) {
    %c0_i32 = arith.constant 0 : i32
    %c0_i32_0 = arith.constant 0 : i32
    %c0_i32_1 = arith.constant 0 : i32
    return %c0_i32, %c0_i32_0 : i32, i32
  }
  func.func @transform_1(%arg0: i32) -> (i32, i32, i32) {
    %c0_i32 = arith.constant 0 : i32
    %c0_i32_0 = arith.constant 0 : i32
    %c0_i32_1 = arith.constant 0 : i32
    %c0_i32_2 = arith.constant 0 : i32
    return %c0_i32, %c0_i32_0, %c0_i32_1 : i32, i32, i32
  }
  func.func @transform_2(%arg0: i32) -> (i32, i32, i32) {
    %c0_i32 = arith.constant 0 : i32
    %c0_i32_0 = arith.constant 0 : i32
    %c0_i32_1 = arith.constant 0 : i32
    %c0_i32_2 = arith.constant 0 : i32
    return %c0_i32, %c0_i32_0, %c0_i32_1 : i32, i32, i32
  }
  func.func @transform_3(%arg0: i32) -> (i32, i32) {
    %c0_i32 = arith.constant 0 : i32
    %c0_i32_0 = arith.constant 0 : i32
    %c0_i32_1 = arith.constant 0 : i32
    return %c0_i32, %c0_i32_0 : i32, i32
  }
  func.func @transform_4(%arg0: i32) -> (i32, i32, i32) {
    %c0_i32 = arith.constant 0 : i32
    %c0_i32_0 = arith.constant 0 : i32
    %c0_i32_1 = arith.constant 0 : i32
    %c0_i32_2 = arith.constant 0 : i32
    return %c0_i32, %c0_i32_0, %c0_i32_1 : i32, i32, i32
  }
  func.func @transform_5(%arg0: i32) -> (i32, i32) {
    %c0_i32 = arith.constant 0 : i32
    %c0_i32_0 = arith.constant 0 : i32
    %c0_i32_1 = arith.constant 0 : i32
    return %c0_i32, %c0_i32_0 : i32, i32
  }
  func.func @transform_6(%arg0: i32) -> (i32, i32) {
    %c0_i32 = arith.constant 0 : i32
    %c0_i32_0 = arith.constant 0 : i32
    %c0_i32_1 = arith.constant 0 : i32
    return %c0_i32, %c0_i32_0 : i32, i32
  }
  func.func @transform_7(%arg0: i32) -> (i32, i32) {
    %c0_i32 = arith.constant 0 : i32
    %c0_i32_0 = arith.constant 0 : i32
    %c0_i32_1 = arith.constant 0 : i32
    return %c0_i32, %c0_i32_0 : i32, i32
  }
}

</mosaic_0001>

<bundles_post_ra>
// kernel: tpu_custom_call.1
= control target key start
LH: loop header
LB: loop body
LE: loop exit
PB: predicated region body
PF: predicated region fallthrough
CT: control target
= control target key end

     0   :  { %12 = vsyncpa [#allocation3], 0  ;;  %s2002_s0 = inlined_call_operand.hbm [shape: bf16[16,32], index: 0, kind: input, shape index: {}]   ;;  %s2003_s1 = inlined_call_operand.hbm [shape: f32[2,2,32], index: 1, kind: input, shape index: {}]   ;;  %s2004_s2 = inlined_call_operand.hbm [shape: bf16[2,32,32], index: 2, kind: input, shape index: {}]   ;;  %s2005_s3 = inlined_call_operand.hbm [shape: bf16[64,64], index: 3, kind: input, shape index: {}]   ;;  %s2006_s4 = inlined_call_operand.vmem [shape: f32[2,1,32], index: 4, kind: input, shape index: {}]   ;;  %s2007_s5 = inlined_call_operand.vmem [shape: bf16[32,128], index: 5, kind: input, shape index: {}]   ;;  %s2008_s6 = inlined_call_operand.vmem [shape: f32[1,128], index: 6, kind: input, shape index: {}]   ;;  %s2009_s7 = inlined_call_operand.hbm [shape: f32[16,128], index: 7, kind: output, shape index: {}]  }
   0x1   :  { %13 = vsyncpa [#allocation6], 0 }
   0x2   :  { %14 = vsyncpa [#allocation9], 0 }
   0x3   :  { %15 = vsyncpa [#allocation4], 0  ;;  %s1626_s24 = smov [#allocation5]   ;;  %s1508_s28 = scalar_lea.hbm %s2003_s1, 64 }
   0x4   :  { %s33_s25 = sshll.u32 %s1626_s24, 4  ;;  %p1509_p0 = scmp.ne.s32.totalorder %s2003_s1, %s1508_s28  ;;  %s34_s25 = int_to_ptr.vmem [resolvable:$true] %s33_s25 }
   0x5   :  { %p1512_p1 = scmp.lt.u32.totalorder %s1508_s28, %s2003_s1 }
   0x7   :  { %p1514_p2 = pnand %p1512_p1, %p1509_p0 }
   0x9   :  { %1517 = shalt.err (!%p1514_p2)
}
   0xa   :  { %s1518_s10 = scalar_lea.vmem %s34_s25, 64  ;;  %p1523_p4 = scmp.lt.s32.totalorder %s34_s25, %s34_s25 }
   0xb   :  { %p1519_p3 = scmp.ne.s32.totalorder %s34_s25, %s1518_s10  ;;  %p1524_p5 = scmp.lt.s32.totalorder %s1518_s10, %s1518_s10 }
   0xd   :  { %p1525_p6 = por %p1524_p5, %p1523_p4 }
   0xf   :  { %p1526_p7 = pnand %p1525_p6, %p1519_p3 }
  0x11   :  { %1529 = shalt.err (!%p1526_p7)
}
  0x12   :  { %s1627_s11 = smov 32   ;;  %s1628_s12 = smov 2  }
  0x13   :  { %39 = dma.hbm_to_vmem [thread:$0]  %s2003_s1, 64, %s34_s25, [#allocation6], %s1627_s11, %s1627_s11, %s1628_s12  }
  0x14   :  { %s1629_s15 = smov [#allocation2]   ;;  %s1530_s19 = scalar_lea.hbm %s2002_s0, 128 }
  0x15   :  { %s21_s16 = sshll.u32 %s1629_s15, 4  ;;  %p1531_p8 = scmp.ne.s32.totalorder %s2002_s0, %s1530_s19  ;;  %s22_s16 = int_to_ptr.vmem [resolvable:$true] %s21_s16 }
  0x16   :  { %p1534_p9 = scmp.lt.u32.totalorder %s1530_s19, %s2002_s0 }
  0x18   :  { %p1536_p10 = pnand %p1534_p9, %p1531_p8 }
  0x1a   :  { %1539 = shalt.err (!%p1536_p10)
}
  0x1b   :  { %s1540_s24 = scalar_lea.vmem %s22_s16, 128  ;;  %p1545_p12 = scmp.lt.s32.totalorder %s22_s16, %s22_s16 }
  0x1c   :  { %p1541_p11 = scmp.ne.s32.totalorder %s22_s16, %s1540_s24  ;;  %p1546_p13 = scmp.lt.s32.totalorder %s1540_s24, %s1540_s24 }
  0x1e   :  { %p1547_p0 = por %p1546_p13, %p1545_p12 }
  0x20   :  { %p1548_p1 = pnand %p1547_p0, %p1541_p11 }
  0x22   :  { %1551 = shalt.err (!%p1548_p1)
}
  0x23   :  { %s1630_s1 = smov 64   ;;  %s1631_s25 = smov 4  }
  0x24   :  { %27 = dma.hbm_to_vmem [thread:$0]  %s2002_s0, 128, %s22_s16, [#allocation3], %s1630_s1, %s1630_s1, %s1631_s25  }
  0x25   :  { %s1632_s28 = smov [#allocation7]   ;;  %s1633_s30 = smov [#allocation8]  }
  0x26   :  { %s45_s29 = sshll.u32 %s1632_s28, 4  ;;  %s57_s8 = sshll.u32 %s1633_s30, 4  ;;  %s46_s29 = int_to_ptr.vmem [resolvable:$true] %s45_s29  ;;  %s1709_s8 = int_to_ptr.vmem [resolvable:$true] %s57_s8 }
  0x27   :  { %s1552_s12 = scalar_lea.hbm %s2004_s2, 512 }
  0x28   :  { %p1553_p2 = scmp.ne.s32.totalorder %s2004_s2, %s1552_s12  ;;  %p1556_p3 = scmp.lt.u32.totalorder %s1552_s12, %s2004_s2 }
  0x2a   :  { %p1558_p4 = pnand %p1556_p3, %p1553_p2 }
  0x2c   :  { %1561 = shalt.err (!%p1558_p4)
}
  0x2d   :  { %s1562_s0 = scalar_lea.vmem %s46_s29, 512  ;;  %p1567_p6 = scmp.lt.s32.totalorder %s46_s29, %s46_s29 }
  0x2e   :  { %p1563_p5 = scmp.ne.s32.totalorder %s46_s29, %s1562_s0  ;;  %p1568_p7 = scmp.lt.s32.totalorder %s1562_s0, %s1562_s0 }
  0x30   :  { %p1569_p8 = por %p1568_p7, %p1567_p6 }
  0x32   :  { %p1570_p9 = pnand %p1569_p8, %p1563_p5 }
  0x34   :  { %1573 = shalt.err (!%p1570_p9)
}
  0x35   :  { %51 = dma.hbm_to_vmem [thread:$0]  %s2004_s2, 512, %s46_s29, [#allocation6], %s1630_s1, %s1630_s1, %s1631_s25  }
  0x36   :  { %s1574_s21 = scalar_lea.hbm %s2005_s3, 512 }
  0x37   :  { %p1575_p10 = scmp.ne.s32.totalorder %s2005_s3, %s1574_s21  ;;  %p1578_p11 = scmp.lt.u32.totalorder %s1574_s21, %s2005_s3 }
  0x39   :  { %p1580_p12 = pnand %p1578_p11, %p1575_p10 }
  0x3b   :  { %1583 = shalt.err (!%p1580_p12)
}
  0x3c   :  { %s1584_s27 = scalar_lea.vmem %s1709_s8, 512  ;;  %p1589_p0 = scmp.lt.s32.totalorder %s1709_s8, %s1709_s8 }
  0x3d   :  { %p1585_p13 = scmp.ne.s32.totalorder %s1709_s8, %s1584_s27  ;;  %p1590_p1 = scmp.lt.s32.totalorder %s1584_s27, %s1584_s27 }
  0x3f   :  { %p1591_p2 = por %p1590_p1, %p1589_p0 }
  0x41   :  { %p1592_p3 = pnand %p1591_p2, %p1585_p13 }
  0x43   :  { %1595 = shalt.err (!%p1592_p3)
}
  0x44   :  { %63 = dma.hbm_to_vmem [thread:$0]  %s2005_s3, 512, %s1709_s8, [#allocation9], %s1630_s1, %s1630_s1, %s1631_s25  }
  0x45   :  { %1618 = dma.done.wait [#allocation3], 128  }
  0x46   :  { %1619 = vsyncadd [#allocation3], 4294967168 }
  0x47   :  { %1620 = dma.done.wait [#allocation6], 576  }
  0x48   :  { %1621 = vsyncadd [#allocation6], 4294966720 }
  0x49   :  { %1622 = dma.done.wait [#allocation9], 512  }
  0x4a   :  { %1623 = vsyncadd [#allocation9], 4294966784  ;;  %v1634_v0 = vmov 0.0   ;;  %vm1635_vm0 = vmmov 0   ;;  %v175_v1 = vld [vmem:[#allocation5 + $0x2] sm:$0x3] }
  0x4b   :  { %1283 = vmatprep.subr.bf16.mxu1 %v1634_v0  ;;  %1275 = vmatprep.subr.bf16.mxu0 %v1634_v0  ;;  %v1753_v2 = vld [vmem:[#allocation8] sm:$0xff]   ;;  %v1756_v4 = vld [vmem:[#allocation8 + $0x8] sm:$0xff]   ;;  %v1761_v6 = vld [vmem:[#allocation8 + $0x10] sm:$0xff]   ;;  %vm128_vm1 = vcmask 261120   ;;  %vm206_vm2 = vcmask 523264   ;;  %s1636_s25 = smov 96  }
  0x4c   :  { %1279 = vmatprep.mubr.msk.bf16.mxu0 %vm1635_vm0, %v1634_v0  ;;  %1291 = vmatprep.mubr.msk.bf16.mxu1 %vm1635_vm0, %v1634_v0  ;;  %v1466_v3 = vld [vmem:[#allocation7] sm:$0xff]   ;;  %v1468_v5 = vld [vmem:[#allocation7 + $0x8] sm:$0xff]   ;;  %v1470_v7 = vld [vmem:[#allocation2] sm:$0xff]   ;;  %vm1074_vm3 = vcmask 1041408   ;;  %vm1076_vm4 = vcmask 1043456   ;;  %vm1078_vm5 = vcmask 1045504  }
  0x4d   :  { %177 = vrot.lane.b32.xlu0 %v175_v1, %s1627_s11  ;;  %1284 = vmatpush3.bf16.msra.mxu1 %v1753_v2  ;;  %v1767_v8 = vld [vmem:[#allocation8 + $0x18] sm:$0xff]   ;;  %v1778_v13 = vld [vmem:[#allocation7 + $0x10] sm:$0xff]   ;;  %v1173_v15 = vld [vmem:[%s2006_s4] ss:$0 sm:$0xff]  ;;  %s1637_s12 = smov [#allocation10]  }
  0x4e   :  { %1276 = vmatpush3.bf16.msra.mxu0 %v1466_v3  ;;  %1285 = vmatprep.subr.bf16.mxu1 %v1634_v0  ;;  %v173_v9 = vld [vmem:[#allocation5] sm:$0x3]  ;;  %v1813_v30 = vld [vmem:[%s2006_s4 + $0x1] ss:$0 sm:$0xff]  ;;  %s1158_s13 = sshll.u32 %s1637_s12, 4  ;;  %s1159_s13 = int_to_ptr.vmem [resolvable:$true] %s1158_s13 }
  0x4f   :  { %1277 = vmatprep.subr.bf16.mxu0 %v1634_v0  ;;  %v1781_v14 = vld [vmem:[#allocation7 + $0x18] sm:$0xff]   ;;  %s1596_s14 = scalar_lea.vmem %s1159_s13, 256  ;;  %p1601_p5 = scmp.lt.s32.totalorder %s1159_s13, %s1159_s13 }
  0x50   :  { %p1597_p4 = scmp.ne.s32.totalorder %s1159_s13, %s1596_s14  ;;  %p1602_p6 = scmp.lt.s32.totalorder %s1596_s14, %s1596_s14 }
  0x51   :  { %1286 = vmatpush3.bf16.msra.mxu1 %v1756_v4 }
  0x52   :  { %1278 = vmatpush3.bf16.msra.mxu0 %v1468_v5  ;;  %1287 = vmatprep.subr.bf16.mxu1 %v1634_v0  ;;  %p1603_p7 = por %p1602_p6, %p1601_p5 }
  0x53   :  { %1295 = vmatprep.subr.bf16.mxu0 %v1634_v0 }
  0x54   :  { %p1604_p8 = pnand %p1603_p7, %p1597_p4 }
  0x55   :  { %1288 = vmatpush3.bf16.msra.mxu1 %v1761_v6  ;;  %1280 = vmatmul.mubr.msk.bf16.vlgmr.msra.gmra.mrb[0].mxu0 %vm128_vm1, %v1470_v7 }
  0x56   :  { %1289 = vmatprep.subr.bf16.mxu1 %v1634_v0  ;;  %1299 = vmatprep.mubr.msk.bf16.mxu0 %vm1635_vm0, %v1634_v0 }
  0x57   :  { %1296 = vmatpush3.bf16.msra.mxu0 %v1778_v13 }
  0x58   :  { %1297 = vmatprep.subr.bf16.mxu0 %v1634_v0 }
  0x59   :  { %1290 = vmatpush3.bf16.msra.mxu1 %v1767_v8 }
  0x5a   :  { %1315 = vmatprep.subr.bf16.mxu1 %v1634_v0 }
  0x5b   :  { %1298 = vmatpush3.bf16.msra.mxu0 %v1781_v14 }
  0x5c   :  { %1303 = vmatprep.subr.bf16.mxu0 %v1634_v0 }
  0xbf   :  { %v178_v10 = vpop.permute.xlu0 %177 }
  0xc0   :  { %v180_v11 = vsel %vm128_vm1, %v173_v9, %v178_v10 }
  0xc1   :  { %v181_v12 = vpack.c.bf16 %v180_v11, %v180_v11 }
  0xc3   :  { %1292 = vmatmul.mubr.msk.bf16.vlgmr.msra.gmra.mrb[0].mxu1 %vm206_vm2, %v181_v12 }
  0xc4   :  { %1319 = vmatprep.mubr.msk.bf16.mxu1 %vm1635_vm0, %v1634_v0  ;;  %1316 = vmatpush3.bf16.msra.mxu1 %v1778_v13 }
  0xc5   :  { %1317 = vmatprep.subr.bf16.mxu1 %v1634_v0 }
  0xc8   :  { %1318 = vmatpush3.bf16.msra.mxu1 %v1781_v14 }
  0xc9   :  { %1323 = vmatprep.subr.bf16.mxu1 %v1634_v0 }
 0x128   :  { %v166_v16 = vpop.f32.mrb[0].mxu0 }
 0x129   :  { %v1281_v17 = vpop.f32.mrb[1].mxu0  ;;  %v1795_v21 = vadd.f32 %v1173_v15, %v166_v16 }
 0x12a   :  { %v169_v18 = vpop.f32.mrb[2].mxu0 }
 0x12b   :  { %v1793_v19 = vadd.f32 %v1173_v15, %v169_v18  ;;  %v1282_v20 = vpop.f32.mrb[3].mxu0 }
 0x196   :  { %v244_v22 = vpop.f32.mrb[0].mxu1 }
 0x197   :  { %v250_v23 = vadd.f32 %v244_v22, %v1795_v21  ;;  %266 = vrot.lane.b32.xlu0 %v244_v22, %s1636_s25  ;;  %v1293_v24 = vpop.f32.mrb[1].mxu1 }
 0x198   :  { %v247_v25 = vpop.f32.mrb[2].mxu1 }
 0x199   :  { %1476 = vtanh.f32 %v250_v23  ;;  %v1294_v26 = vpop.f32.mrb[3].mxu1 }
 0x1a3   :  { %v1477_v27 = vpop.eup %1476 }
 0x1a4   :  { %v252_v28 = vpack.c.bf16 %v1477_v27, %v1477_v27 }
 0x1a6   :  { %1300 = vmatmul.mubr.msk.bf16.vlgmr.msra.gmra.mrb[4].mxu0 %vm128_vm1, %v252_v28 }
 0x1a7   :  { %1304 = vmatpush3.bf16.msra.mxu0 %v1753_v2  ;;  %1311 = vmatprep.mubr.msk.bf16.mxu0 %vm1635_vm0, %v1634_v0 }
 0x1a8   :  { %1305 = vmatprep.subr.bf16.mxu0 %v1634_v0 }
 0x1ab   :  { %1306 = vmatpush3.bf16.msra.mxu0 %v1756_v4 }
 0x1ac   :  { %1307 = vmatprep.subr.bf16.mxu0 %v1634_v0 }
 0x1af   :  { %1308 = vmatpush3.bf16.msra.mxu0 %v1761_v6 }
 0x1b0   :  { %1309 = vmatprep.subr.bf16.mxu0 %v1634_v0 }
 0x1b3   :  { %1310 = vmatpush3.bf16.msra.mxu0 %v1767_v8 }
 0x1b4   :  { %1335 = vmatprep.subr.bf16.mxu0 %v1634_v0 }
 0x209   :  { %v267_v29 = vpop.permute.xlu0 %266 }
 0x279   :  { %v306_v31 = vpop.f32.mrb[4].mxu0 }
 0x27a   :  { %v307_v32 = vadd.f32 %v306_v31, %v267_v29  ;;  %v1301_v33 = vpop.f32.mrb[5].mxu0 }
 0x27b   :  { %v309_v34 = vpop.f32.mrb[6].mxu0 }
 0x27c   :  { %v318_v35 = vadd.f32 %v1813_v30, %v307_v32  ;;  %v1302_v36 = vpop.f32.mrb[7].mxu0 }
 0x27e   :  { %1478 = vtanh.f32 %v318_v35 }
 0x288   :  { %v1816_v37 = vpop.eup %1478 }
 0x289   :  { %321 = vrot.lane.b32.xlu1 %v1816_v37, %s1627_s11 }
 0x2fb   :  { %v322_v38 = vpop.permute.xlu1 %321 }
 0x2fc   :  { %v324_v39 = vsel %vm128_vm1, %v1477_v27, %v322_v38 }
 0x2fd   :  { %v325_v40 = vpack.c.bf16 %v324_v39, %v324_v39 }
 0x2ff   :  { %1312 = vmatmul.mubr.msk.bf16.vlgmr.msra.gmra.mrb[8].mxu0 %vm206_vm2, %v325_v40 }
 0x300   :  { %1336 = vmatpush3.bf16.msra.mxu0 %v1778_v13  ;;  %1339 = vmatprep.mubr.msk.bf16.mxu0 %vm1635_vm0, %v1634_v0 }
 0x301   :  { %1337 = vmatprep.subr.bf16.mxu0 %v1634_v0 }
 0x304   :  { %1338 = vmatpush3.bf16.msra.mxu0 %v1781_v14 }
 0x305   :  { %1343 = vmatprep.subr.bf16.mxu0 %v1634_v0 }
 0x3d2   :  { %v363_v41 = vpop.f32.mrb[8].mxu0 }
 0x3d3   :  { %v370_v42 = vrot.slane %v363_v41, 6  ;;  %377 = vrot.lane.b32.xlu1 %v363_v41, %s1636_s25  ;;  %v1313_v43 = vpop.f32.mrb[9].mxu0 }
 0x3d4   :  { %v366_v44 = vpop.f32.mrb[10].mxu0 }
 0x3d5   :  { %v372_v45 = vadd.f32 %v370_v42, %v1795_v21  ;;  %v1314_v46 = vpop.f32.mrb[11].mxu0 }
 0x3d7   :  { %1480 = vtanh.f32 %v372_v45 }
 0x3e1   :  { %v1481_v47 = vpop.eup %1480 }
 0x3e2   :  { %v374_v48 = vpack.c.bf16 %v1481_v47, %v1481_v47 }
 0x3e4   :  { %v376_v49 = vrot.slane %v374_v48, 1 }
 0x3e6   :  { %1320 = vmatmul.mubr.msk.bf16.vlgmr.msra.gmra.mrb[4].mxu1 %vm128_vm1, %v376_v49 }
 0x3e7   :  { %1324 = vmatpush3.bf16.msra.mxu1 %v1753_v2  ;;  %1331 = vmatprep.mubr.msk.bf16.mxu1 %vm1635_vm0, %v1634_v0 }
 0x3e8   :  { %1325 = vmatprep.subr.bf16.mxu1 %v1634_v0 }
 0x3eb   :  { %1326 = vmatpush3.bf16.msra.mxu1 %v1756_v4 }
 0x3ec   :  { %1327 = vmatprep.subr.bf16.mxu1 %v1634_v0 }
 0x3ef   :  { %1328 = vmatpush3.bf16.msra.mxu1 %v1761_v6 }
 0x3f0   :  { %1329 = vmatprep.subr.bf16.mxu1 %v1634_v0 }
 0x3f3   :  { %1330 = vmatpush3.bf16.msra.mxu1 %v1767_v8 }
 0x3f4   :  { %1355 = vmatprep.subr.bf16.mxu1 %v1634_v0 }
 0x445   :  { %v378_v50 = vpop.permute.xlu1 %377 }
 0x4b9   :  { %v417_v51 = vpop.f32.mrb[4].mxu1 }
 0x4ba   :  { %v418_v52 = vadd.f32 %v417_v51, %v378_v50  ;;  %v1321_v53 = vpop.f32.mrb[5].mxu1 }
 0x4bb   :  { %v420_v54 = vpop.f32.mrb[6].mxu1 }
 0x4bc   :  { %v423_v55 = vadd.f32 %v1813_v30, %v418_v52  ;;  %v1322_v56 = vpop.f32.mrb[7].mxu1 }
 0x4be   :  { %1482 = vtanh.f32 %v423_v55 }
 0x4c8   :  { %v1483_v57 = vpop.eup %1482 }
 0x4c9   :  { %v426_v58 = vrot.slane %v1483_v57, 6 }
 0x4cb   :  { %427 = vrot.lane.b32.xlu0 %v426_v58, %s1627_s11  ;;  %v1075_v26 = vsel %vm1074_vm3, %v1816_v37, %v426_v58 }
 0x53d   :  { %v428_v59 = vpop.permute.xlu0 %427 }
 0x53e   :  { %v430_v60 = vsel %vm128_vm1, %v1481_v47, %v428_v59 }
 0x53f   :  { %v431_v61 = vpack.c.bf16 %v430_v60, %v430_v60 }
 0x541   :  { %v433_v62 = vrot.slane %v431_v61, 1 }
 0x543   :  { %1332 = vmatmul.mubr.msk.bf16.vlgmr.msra.gmra.mrb[8].mxu1 %vm206_vm2, %v433_v62 }
 0x544   :  { %1356 = vmatpush3.bf16.msra.mxu1 %v1778_v13  ;;  %1359 = vmatprep.mubr.msk.bf16.mxu1 %vm1635_vm0, %v1634_v0 }
 0x545   :  { %1357 = vmatprep.subr.bf16.mxu1 %v1634_v0 }
 0x548   :  { %1358 = vmatpush3.bf16.msra.mxu1 %v1781_v14 }
 0x549   :  { %1363 = vmatprep.subr.bf16.mxu1 %v1634_v0 }
 0x616   :  { %v471_v63 = vpop.f32.mrb[8].mxu1 }
 0x617   :  { %v478_v1 = vrot.slane %v471_v63, 4  ;;  %485 = vrot.lane.b32.xlu1 %v471_v63, %s1636_s25  ;;  %v1333_v3 = vpop.f32.mrb[9].mxu1 }
 0x618   :  { %v474_v5 = vpop.f32.mrb[10].mxu1 }
 0x619   :  { %v480_v7 = vadd.f32 %v478_v1, %v1795_v21  ;;  %v1334_v9 = vpop.f32.mrb[11].mxu1 }
 0x61b   :  { %1484 = vtanh.f32 %v480_v7 }
 0x625   :  { %v1485_v10 = vpop.eup %1484 }
 0x626   :  { %v482_v11 = vpack.c.bf16 %v1485_v10, %v1485_v10 }
 0x628   :  { %v484_v12 = vrot.slane %v482_v11, 2 }
 0x62a   :  { %1340 = vmatmul.mubr.msk.bf16.vlgmr.msra.gmra.mrb[12].mxu0 %vm128_vm1, %v484_v12 }
 0x62b   :  { %1344 = vmatpush3.bf16.msra.mxu0 %v1753_v2  ;;  %1351 = vmatprep.mubr.msk.bf16.mxu0 %vm1635_vm0, %v1634_v0 }
 0x62c   :  { %1345 = vmatprep.subr.bf16.mxu0 %v1634_v0 }
 0x62f   :  { %1346 = vmatpush3.bf16.msra.mxu0 %v1756_v4 }
 0x630   :  { %1347 = vmatprep.subr.bf16.mxu0 %v1634_v0 }
 0x633   :  { %1348 = vmatpush3.bf16.msra.mxu0 %v1761_v6 }
 0x634   :  { %1349 = vmatprep.subr.bf16.mxu0 %v1634_v0 }
 0x637   :  { %1350 = vmatpush3.bf16.msra.mxu0 %v1767_v8 }
 0x638   :  { %1375 = vmatprep.subr.bf16.mxu0 %v1634_v0 }
 0x689   :  { %v486_v15 = vpop.permute.xlu1 %485 }
 0x6fd   :  { %v525_v16 = vpop.f32.mrb[12].mxu0 }
 0x6fe   :  { %v526_v17 = vadd.f32 %v525_v16, %v486_v15  ;;  %v1341_v18 = vpop.f32.mrb[13].mxu0 }
 0x6ff   :  { %v528_v20 = vpop.f32.mrb[14].mxu0 }
 0x700   :  { %v531_v22 = vadd.f32 %v1813_v30, %v526_v17  ;;  %v1342_v23 = vpop.f32.mrb[15].mxu0 }
 0x702   :  { %1486 = vtanh.f32 %v531_v22 }
 0x70c   :  { %v1487_v24 = vpop.eup %1486 }
 0x70d   :  { %v534_v25 = vrot.slane %v1487_v24, 4 }
 0x70f   :  { %535 = vrot.lane.b32.xlu0 %v534_v25, %s1627_s11  ;;  %v1077_v27 = vsel %vm1076_vm4, %v1075_v26, %v534_v25 }
 0x781   :  { %v536_v28 = vpop.permute.xlu0 %535 }
 0x782   :  { %v538_v29 = vsel %vm128_vm1, %v1485_v10, %v536_v28 }
 0x783   :  { %v539_v31 = vpack.c.bf16 %v538_v29, %v538_v29 }
 0x785   :  { %v541_v32 = vrot.slane %v539_v31, 2 }
 0x787   :  { %1352 = vmatmul.mubr.msk.bf16.vlgmr.msra.gmra.mrb[16].mxu0 %vm206_vm2, %v541_v32 }
 0x788   :  { %1376 = vmatpush3.bf16.msra.mxu0 %v1778_v13  ;;  %1379 = vmatprep.mubr.msk.bf16.mxu0 %vm1635_vm0, %v1634_v0 }
 0x789   :  { %1377 = vmatprep.subr.bf16.mxu0 %v1634_v0 }
 0x78c   :  { %1378 = vmatpush3.bf16.msra.mxu0 %v1781_v14 }
 0x78d   :  { %1383 = vmatprep.subr.bf16.mxu0 %v1634_v0 }
 0x85a   :  { %v579_v33 = vpop.f32.mrb[16].mxu0 }
 0x85b   :  { %v586_v34 = vrot.slane %v579_v33, 2  ;;  %593 = vrot.lane.b32.xlu1 %v579_v33, %s1636_s25  ;;  %v1353_v35 = vpop.f32.mrb[17].mxu0 }
 0x85c   :  { %v582_v36 = vpop.f32.mrb[18].mxu0 }
 0x85d   :  { %v588_v37 = vadd.f32 %v586_v34, %v1795_v21  ;;  %v1354_v38 = vpop.f32.mrb[19].mxu0 }
 0x85f   :  { %1488 = vtanh.f32 %v588_v37 }
 0x869   :  { %v1489_v39 = vpop.eup %1488 }
 0x86a   :  { %v590_v40 = vpack.c.bf16 %v1489_v39, %v1489_v39 }
 0x86c   :  { %v592_v41 = vrot.slane %v590_v40, 3 }
 0x86e   :  { %1360 = vmatmul.mubr.msk.bf16.vlgmr.msra.gmra.mrb[12].mxu1 %vm128_vm1, %v592_v41 }
 0x86f   :  { %1364 = vmatpush3.bf16.msra.mxu1 %v1753_v2  ;;  %1371 = vmatprep.mubr.msk.bf16.mxu1 %vm1635_vm0, %v1634_v0 }
 0x870   :  { %1365 = vmatprep.subr.bf16.mxu1 %v1634_v0 }
 0x873   :  { %1366 = vmatpush3.bf16.msra.mxu1 %v1756_v4 }
 0x874   :  { %1367 = vmatprep.subr.bf16.mxu1 %v1634_v0 }
 0x877   :  { %1368 = vmatpush3.bf16.msra.mxu1 %v1761_v6 }
 0x878   :  { %1369 = vmatprep.subr.bf16.mxu1 %v1634_v0 }
 0x87b   :  { %1370 = vmatpush3.bf16.msra.mxu1 %v1767_v8 }
 0x87c   :  { %1395 = vmatprep.subr.bf16.mxu1 %v1634_v0 }
 0x8cd   :  { %v594_v21 = vpop.permute.xlu1 %593 }
 0x941   :  { %v633_v42 = vpop.f32.mrb[12].mxu1 }
 0x942   :  { %v634_v43 = vadd.f32 %v633_v42, %v594_v21  ;;  %v1361_v44 = vpop.f32.mrb[13].mxu1 }
 0x943   :  { %v636_v45 = vpop.f32.mrb[14].mxu1 }
 0x944   :  { %v639_v46 = vadd.f32 %v1813_v30, %v634_v43  ;;  %v1362_v47 = vpop.f32.mrb[15].mxu1 }
 0x946   :  { %1490 = vtanh.f32 %v639_v46 }
 0x950   :  { %v1491_v48 = vpop.eup %1490 }
 0x951   :  { %v642_v49 = vrot.slane %v1491_v48, 2 }
 0x953   :  { %643 = vrot.lane.b32.xlu0 %v642_v49, %s1627_s11  ;;  %v1893_v50 = vsel %vm1078_vm5, %v1077_v27, %v642_v49 }
 0x9c5   :  { %v644_v51 = vpop.permute.xlu0 %643 }
 0x9c6   :  { %v646_v52 = vsel %vm128_vm1, %v1489_v39, %v644_v51 }
 0x9c7   :  { %v647_v53 = vpack.c.bf16 %v646_v52, %v646_v52 }
 0x9c9   :  { %v649_v54 = vrot.slane %v647_v53, 3 }
 0x9cb   :  { %1372 = vmatmul.mubr.msk.bf16.vlgmr.msra.gmra.mrb[16].mxu1 %vm206_vm2, %v649_v54 }
 0x9cc   :  { %1396 = vmatpush3.bf16.msra.mxu1 %v1778_v13  ;;  %1399 = vmatprep.mubr.msk.bf16.mxu1 %vm1635_vm0, %v1634_v0 }
 0x9cd   :  { %1397 = vmatprep.subr.bf16.mxu1 %v1634_v0 }
 0x9d0   :  { %1398 = vmatpush3.bf16.msra.mxu1 %v1781_v14 }
 0x9d1   :  { %1403 = vmatprep.subr.bf16.mxu1 %v1634_v0 }
 0xa9e   :  { %v687_v55 = vpop.f32.mrb[16].mxu1 }
 0xa9f   :  { %v693_v56 = vadd.f32 %v687_v55, %v1793_v19  ;;  %697 = vrot.lane.b32.xlu1 %v687_v55, %s1636_s25  ;;  %v1373_v57 = vpop.f32.mrb[17].mxu1 }
 0xaa0   :  { %v690_v58 = vpop.f32.mrb[18].mxu1 }
 0xaa1   :  { %1492 = vtanh.f32 %v693_v56  ;;  %v1374_v59 = vpop.f32.mrb[19].mxu1 }
 0xaab   :  { %v1493_v60 = vpop.eup %1492 }
 0xaac   :  { %v695_v61 = vpack.c.bf16 %v1493_v60, %v1493_v60 }
 0xaae   :  { %1380 = vmatmul.mubr.msk.bf16.vlgmr.msra.gmra.mrb[20].mxu0 %vm128_vm1, %v695_v61 }
 0xaaf   :  { %1384 = vmatpush3.bf16.msra.mxu0 %v1753_v2  ;;  %1391 = vmatprep.mubr.msk.bf16.mxu0 %vm1635_vm0, %v1634_v0 }
 0xab0   :  { %1385 = vmatprep.subr.bf16.mxu0 %v1634_v0 }
 0xab3   :  { %1386 = vmatpush3.bf16.msra.mxu0 %v1756_v4 }
 0xab4   :  { %1387 = vmatprep.subr.bf16.mxu0 %v1634_v0 }
 0xab7   :  { %1388 = vmatpush3.bf16.msra.mxu0 %v1761_v6 }
 0xab8   :  { %1389 = vmatprep.subr.bf16.mxu0 %v1634_v0 }
 0xabb   :  { %1390 = vmatpush3.bf16.msra.mxu0 %v1767_v8 }
 0xabc   :  { %1415 = vmatprep.subr.bf16.mxu0 %v1634_v0 }
 0xb11   :  { %v698_v62 = vpop.permute.xlu1 %697 }
 0xb81   :  { %v737_v63 = vpop.f32.mrb[20].mxu0 }
 0xb82   :  { %v738_v1 = vadd.f32 %v737_v63, %v698_v62  ;;  %v1381_v3 = vpop.f32.mrb[21].mxu0 }
 0xb83   :  { %v740_v5 = vpop.f32.mrb[22].mxu0 }
 0xb84   :  { %v743_v7 = vadd.f32 %v1813_v30, %v738_v1  ;;  %v1382_v9 = vpop.f32.mrb[23].mxu0 }
 0xb85   :  { %v1474_v9 = vld [vmem:[%s2007_s5] sm:$0xff]  }
 0xb86   :  { %1494 = vtanh.f32 %v743_v7 }
 0xb90   :  { %v1917_v10 = vpop.eup %1494 }
 0xb91   :  { %746 = vrot.lane.b32.xlu0 %v1917_v10, %s1627_s11 }
 0xc03   :  { %v747_v11 = vpop.permute.xlu0 %746 }
 0xc04   :  { %v749_v12 = vsel %vm128_vm1, %v1493_v60, %v747_v11 }
 0xc05   :  { %v750_v15 = vpack.c.bf16 %v749_v12, %v749_v12 }
 0xc07   :  { %1392 = vmatmul.mubr.msk.bf16.vlgmr.msra.gmra.mrb[24].mxu0 %vm206_vm2, %v750_v15 }
 0xc08   :  { %1416 = vmatpush3.bf16.msra.mxu0 %v1778_v13  ;;  %1419 = vmatprep.mubr.msk.bf16.mxu0 %vm1635_vm0, %v1634_v0 }
 0xc09   :  { %1417 = vmatprep.subr.bf16.mxu0 %v1634_v0 }
 0xc0c   :  { %1418 = vmatpush3.bf16.msra.mxu0 %v1781_v14 }
 0xc0d   :  { %1423 = vmatprep.subr.bf16.mxu0 %v1634_v0 }
 0xcda   :  { %v788_v16 = vpop.f32.mrb[24].mxu0 }
 0xcdb   :  { %v795_v17 = vrot.slane %v788_v16, 6  ;;  %802 = vrot.lane.b32.xlu1 %v788_v16, %s1636_s25  ;;  %v1393_v18 = vpop.f32.mrb[25].mxu0 }
 0xcdc   :  { %v791_v20 = vpop.f32.mrb[26].mxu0 }
 0xcdd   :  { %v797_v22 = vadd.f32 %v795_v17, %v1793_v19  ;;  %v1394_v23 = vpop.f32.mrb[27].mxu0 }
 0xcdf   :  { %1496 = vtanh.f32 %v797_v22 }
 0xce9   :  { %v1497_v24 = vpop.eup %1496 }
 0xcea   :  { %v799_v25 = vpack.c.bf16 %v1497_v24, %v1497_v24 }
 0xcec   :  { %v801_v26 = vrot.slane %v799_v25, 1 }
 0xcee   :  { %1400 = vmatmul.mubr.msk.bf16.vlgmr.msra.gmra.mrb[20].mxu1 %vm128_vm1, %v801_v26 }
 0xcef   :  { %1404 = vmatpush3.bf16.msra.mxu1 %v1753_v2  ;;  %1411 = vmatprep.mubr.msk.bf16.mxu1 %vm1635_vm0, %v1634_v0 }
 0xcf0   :  { %1405 = vmatprep.subr.bf16.mxu1 %v1634_v0 }
 0xcf3   :  { %1406 = vmatpush3.bf16.msra.mxu1 %v1756_v4 }
 0xcf4   :  { %1407 = vmatprep.subr.bf16.mxu1 %v1634_v0 }
 0xcf7   :  { %1408 = vmatpush3.bf16.msra.mxu1 %v1761_v6 }
 0xcf8   :  { %1409 = vmatprep.subr.bf16.mxu1 %v1634_v0 }
 0xcfb   :  { %1410 = vmatpush3.bf16.msra.mxu1 %v1767_v8 }
 0xcfc   :  { %1435 = vmatprep.subr.bf16.mxu1 %v1634_v0 }
 0xd4d   :  { %v803_v27 = vpop.permute.xlu1 %802 }
 0xdc1   :  { %v842_v28 = vpop.f32.mrb[20].mxu1 }
 0xdc2   :  { %v843_v29 = vadd.f32 %v842_v28, %v803_v27  ;;  %v1401_v31 = vpop.f32.mrb[21].mxu1 }
 0xdc3   :  { %v845_v32 = vpop.f32.mrb[22].mxu1 }
 0xdc4   :  { %v848_v33 = vadd.f32 %v1813_v30, %v843_v29  ;;  %v1402_v34 = vpop.f32.mrb[23].mxu1 }
 0xdc6   :  { %1498 = vtanh.f32 %v848_v33 }
 0xdd0   :  { %v1499_v35 = vpop.eup %1498 }
 0xdd1   :  { %v851_v36 = vrot.slane %v1499_v35, 6 }
 0xdd3   :  { %852 = vrot.lane.b32.xlu0 %v851_v36, %s1627_s11 }
 0xe45   :  { %v853_v37 = vpop.permute.xlu0 %852 }
 0xe46   :  { %v855_v38 = vsel %vm128_vm1, %v1497_v24, %v853_v37  ;;  %v1201_v24 = vld [vmem:[%s2008_s6] ss:$0 sm:$0xff] }
 0xe47   :  { %v856_v39 = vpack.c.bf16 %v855_v38, %v855_v38 }
 0xe49   :  { %v858_v40 = vrot.slane %v856_v39, 1 }
 0xe4b   :  { %1412 = vmatmul.mubr.msk.bf16.vlgmr.msra.gmra.mrb[24].mxu1 %vm206_vm2, %v858_v40 }
 0xe4c   :  { %1436 = vmatpush3.bf16.msra.mxu1 %v1778_v13  ;;  %1439 = vmatprep.mubr.msk.bf16.mxu1 %vm1635_vm0, %v1634_v0 }
 0xe4d   :  { %1437 = vmatprep.subr.bf16.mxu1 %v1634_v0 }
 0xe50   :  { %1438 = vmatpush3.bf16.msra.mxu1 %v1781_v14 }
 0xe51   :  { %1443 = vmatprep.subr.bf16.mxu1 %v1634_v0 }
 0xf1e   :  { %v896_v41 = vpop.f32.mrb[24].mxu1 }
 0xf1f   :  { %v903_v21 = vrot.slane %v896_v41, 4  ;;  %910 = vrot.lane.b32.xlu1 %v896_v41, %s1636_s25  ;;  %v1413_v42 = vpop.f32.mrb[25].mxu1 }
 0xf20   :  { %v899_v43 = vpop.f32.mrb[26].mxu1 }
 0xf21   :  { %v905_v44 = vadd.f32 %v903_v21, %v1793_v19  ;;  %v1414_v45 = vpop.f32.mrb[27].mxu1 }
 0xf23   :  { %1500 = vtanh.f32 %v905_v44 }
 0xf2d   :  { %v1501_v13 = vpop.eup %1500 }
 0xf2e   :  { %v907_v46 = vpack.c.bf16 %v1501_v13, %v1501_v13 }
 0xf30   :  { %v909_v47 = vrot.slane %v907_v46, 2 }
 0xf32   :  { %1420 = vmatmul.mubr.msk.bf16.vlgmr.msra.gmra.mrb[28].mxu0 %vm128_vm1, %v909_v47 }
 0xf33   :  { %1424 = vmatpush3.bf16.msra.mxu0 %v1753_v2  ;;  %1431 = vmatprep.mubr.msk.bf16.mxu0 %vm1635_vm0, %v1634_v0 }
 0xf34   :  { %1425 = vmatprep.subr.bf16.mxu0 %v1634_v0 }
 0xf37   :  { %1426 = vmatpush3.bf16.msra.mxu0 %v1756_v4  ;;  %v1080_v4 = vsel %vm1074_vm3, %v1917_v10, %v851_v36 }
 0xf38   :  { %1427 = vmatprep.subr.bf16.mxu0 %v1634_v0 }
 0xf3b   :  { %1428 = vmatpush3.bf16.msra.mxu0 %v1761_v6 }
 0xf3c   :  { %1429 = vmatprep.subr.bf16.mxu0 %v1634_v0 }
 0xf3f   :  { %1430 = vmatpush3.bf16.msra.mxu0 %v1767_v8 }
 0xf91   :  { %v911_v14 = vpop.permute.xlu1 %910 }
0x1005   :  { %v950_v48 = vpop.f32.mrb[28].mxu0 }
0x1006   :  { %v951_v49 = vadd.f32 %v950_v48, %v911_v14  ;;  %v1421_v51 = vpop.f32.mrb[29].mxu0 }
0x1007   :  { %v953_v2 = vpop.f32.mrb[30].mxu0 }
0x1008   :  { %v956_v52 = vadd.f32 %v1813_v30, %v951_v49  ;;  %v1422_v53 = vpop.f32.mrb[31].mxu0 }
0x100a   :  { %1502 = vtanh.f32 %v956_v52 }
0x1014   :  { %v1503_v54 = vpop.eup %1502 }
0x1015   :  { %v959_v55 = vrot.slane %v1503_v54, 4 }
0x1017   :  { %960 = vrot.lane.b32.xlu0 %v959_v55, %s1627_s11  ;;  %v1081_v6 = vsel %vm1076_vm4, %v1080_v4, %v959_v55 }
0x1089   :  { %v961_v56 = vpop.permute.xlu0 %960 }
0x108a   :  { %v963_v8 = vsel %vm128_vm1, %v1501_v13, %v961_v56 }
0x108b   :  { %v964_v57 = vpack.c.bf16 %v963_v8, %v963_v8 }
0x108d   :  { %v966_v58 = vrot.slane %v964_v57, 2 }
0x108f   :  { %1432 = vmatmul.mubr.msk.bf16.vlgmr.msra.gmra.mrb[32].mxu0 %vm206_vm2, %v966_v58 }
0x1162   :  { %v1004_v59 = vpop.f32.mrb[32].mxu0 }
0x1163   :  { %v1011_v60 = vrot.slane %v1004_v59, 2  ;;  %1018 = vrot.lane.b32.xlu1 %v1004_v59, %s1636_s25  ;;  %v1433_v61 = vpop.f32.mrb[33].mxu0 }
0x1164   :  { %v1007_v62 = vpop.f32.mrb[34].mxu0 }
0x1165   :  { %v1013_v63 = vadd.f32 %v1011_v60, %v1793_v19  ;;  %v1434_v1 = vpop.f32.mrb[35].mxu0  ;;  %v1475_v19 = vld [vmem:[%s2007_s5 + $0x8] sm:$0xff]  }
0x1167   :  { %1504 = vtanh.f32 %v1013_v63 }
0x1171   :  { %v1505_v3 = vpop.eup %1504 }
0x1172   :  { %v1015_v5 = vpack.c.bf16 %v1505_v3, %v1505_v3 }
0x1174   :  { %v1017_v7 = vrot.slane %v1015_v5, 3 }
0x1176   :  { %1440 = vmatmul.mubr.msk.bf16.vlgmr.msra.gmra.mrb[28].mxu1 %vm128_vm1, %v1017_v7 }
0x1177   :  { %1447 = vmatprep.mubr.msk.bf16.mxu1 %vm1635_vm0, %v1634_v0  ;;  %1444 = vmatpush3.bf16.msra.mxu1 %v1474_v9 }
0x1178   :  { %1445 = vmatprep.subr.bf16.mxu1 %v1634_v0 }
0x117b   :  { %1446 = vmatpush3.bf16.msra.mxu1 %v1475_v19 }
0x11d5   :  { %v1019_v10 = vpop.permute.xlu1 %1018 }
0x1249   :  { %v1058_v11 = vpop.f32.mrb[28].mxu1 }
0x124a   :  { %v1059_v12 = vadd.f32 %v1058_v11, %v1019_v10  ;;  %v1441_v15 = vpop.f32.mrb[29].mxu1 }
0x124b   :  { %v1061_v16 = vpop.f32.mrb[30].mxu1 }
0x124c   :  { %v1064_v17 = vadd.f32 %v1813_v30, %v1059_v12  ;;  %v1442_v18 = vpop.f32.mrb[31].mxu1 }
0x124e   :  { %1506 = vtanh.f32 %v1064_v17 }
0x1258   :  { %v1507_v20 = vpop.eup %1506 }
0x1259   :  { %v1072_v22 = vrot.slane %v1507_v20, 2 }
0x125b   :  { %v1082_v23 = vsel %vm1078_vm5, %v1081_v6, %v1072_v22 }
0x125c   :  { %v1083_v0 = vpack.c.bf16 %v1082_v23, %v1893_v50 }
0x125e   :  { %1448 = vmatmul.mubr.msk.bf16.vlgmr.msra.gmra.mrb[32].mxu1 %vm128_vm1, %v1083_v0 }
0x1331   :  { %v1144_v25 = vpop.f32.mrb[32].mxu1 }
0x1332   :  { %v1145_v26 = vadd.f32 %v1201_v24, %v1144_v25  ;;  %v1449_v27 = vpop.f32.mrb[33].mxu1 }
0x1333   :  { %v1147_v30 = vpop.f32.mrb[34].mxu1 }
0x1334   :  { %1151 = vst [vmem:[#allocation10] sm:$0xff] %v1145_v26  ;;  %v1148_v28 = vadd.f32 %v1201_v24, %v1147_v30  ;;  %v1450_v29 = vpop.f32.mrb[35].mxu1 }
0x1336   :  { %1152 = vst [vmem:[#allocation10 + $0x8] sm:$0xff] %v1148_v28 }
0x1337   :  { %1607 = shalt.err (!%p1604_p8)
}
0x1338   :  { %s1608_s17 = scalar_lea.hbm %s2009_s7, 256 }
0x1339   :  { %p1609_p9 = scmp.ne.s32.totalorder %s2009_s7, %s1608_s17  ;;  %p1612_p10 = scmp.lt.u32.totalorder %s1608_s17, %s2009_s7 }
0x133b   :  { %p1614_p11 = pnand %p1612_p10, %p1609_p9 }
0x133d   :  { %1617 = shalt.err (!%p1614_p11)
}
0x133e   :  { %s1638_s20 = smov 128   ;;  %s1639_s21 = smov 8  }
0x133f   :  { %1164 = dma.vmem_to_hbm [thread:$0]  %s1159_s13, 256, %s2009_s7, [#allocation4], %s1638_s20, %s1638_s20, %s1639_s21  }
0x1340   :  { %1624 = dma.done.wait [#allocation4], 256  }
0x1341   :  { %1625 = vsyncadd [#allocation4], 4294967040 }
0x1342   :  { %1168 = vsyncpa [#allocation3], 1 }
0x1343   :  { %1169 = vsyncpa [#allocation6], 1 }
0x1344   :  { %1170 = vsyncpa [#allocation9], 1 }
0x1345   :  { %1171 = vsyncpa [#allocation4], 1 }

</bundles_post_ra>
